<compile_context>
chip_gen: v7x
topology: tpu7x:2x2x1
jax: 0.10.0
libtpu: 0.0.40
codegen_flags: <defaults>
</compile_context>

<pallas_src>
import jax
import jax.numpy as jnp
from jax.experimental import pallas as pl
from jax.experimental.pallas import tpu as pltpu

MIN_TILE = 128     # lane granularity
MAX_TILE = 65536   # cap on lane tile width (12-row packing keeps VMEM small)
PALLAS_MIN_BATCH = 16384  # auto-threshold for using the Pallas path


def _round_up(x, m):
    return ((x + m - 1) // m) * m


def _postprocess_kernel(p_ref, out_ref):
    # Packed input rows (component-major, batch on the lane axis):
    #   0-1 : cx, cy          2-3 : w,  h
    #   4-5 : img_w, img_h    6-7 : dx, dy
    #   8-9 : 1/rw, 1/rh     10-11: ow, oh
    xy = p_ref[0:2, :]       # (2, T)
    wh = p_ref[2:4, :]
    scale2 = p_ref[4:6, :]
    off2 = p_ref[6:8, :]
    invr2 = p_ref[8:10, :]
    clip2 = p_ref[10:12, :]

    half_wh = 0.5 * wh
    # cxcywh -> xyxy: rows [x_min, y_min, x_max, y_max]
    b = jnp.concatenate([xy - half_wh, xy + half_wh], axis=0)      # (4, T)

    # Duplicate the per-axis operands to 4 rows (sublane concat, XLU filler).
    scale = jnp.concatenate([scale2, scale2], axis=0)
    offset = jnp.concatenate([off2, off2], axis=0)
    invr = jnp.concatenate([invr2, invr2], axis=0)
    clip_hi = jnp.concatenate([clip2, clip2], axis=0)

    # scale by resized image size, subtract padding offset, clamp(min=0)
    b = b * scale - offset
    b = jnp.maximum(b, 0.0)
    # divide by resize ratios (reciprocal was folded into the packing)
    b = b * invr
    # clip to original image size
    b = jnp.minimum(b, clip_hi)

    out_ref[...] = b.astype(out_ref.dtype)


def _postprocess_jnp(boxes, rsz_sizes, ratios, orig_sizes, dxdy):
    """Fused jnp path on (B, 4) layout (small-batch path / reference)."""
    cx, cy, w, h = jnp.split(boxes, 4, axis=1)
    b = jnp.concatenate(
        [cx - 0.5 * w, cy - 0.5 * h, cx + 0.5 * w, cy + 0.5 * h], axis=1)
    img_h, img_w = rsz_sizes[:, 0:1], rsz_sizes[:, 1:2]
    b = b * jnp.concatenate([img_w, img_h, img_w, img_h], axis=1)
    b = b - jnp.concatenate([dxdy, dxdy], axis=1)
    b = jnp.maximum(b, 0.0)
    rh, rw = ratios[:, 0:1], ratios[:, 1:2]
    b = b / jnp.concatenate([rw, rh, rw, rh], axis=1)
    oh, ow = orig_sizes[:, 0:1], orig_sizes[:, 1:2]
    b = jnp.minimum(b, jnp.concatenate([ow, oh, ow, oh], axis=1))
    return b


def _pick_tile_and_grid(B):
    """Choose lane tile / grid: biggest tiles, grid >= 2 and even when possible
    (v7x has 2 TensorCores sharded over the 'parallel' axis)."""
    Bp0 = _round_up(B, MIN_TILE)
    if Bp0 >= 2 * MIN_TILE:
        n = max(2, -(-Bp0 // MAX_TILE))   # at least 2 steps
        n += n % 2                        # even number of steps
        tile = _round_up(-(-Bp0 // n), MIN_TILE)
    else:
        n = 1
        tile = Bp0
    return tile, n, n * tile


def post_process(pred_boxes, rsz_sizes, ratios, orig_sizes, dxdy=None,
                 box_xyxy=False, use_pallas=None, component_major=False):
    """JAX/Pallas equivalent of PostProcess.forward.

    pred_boxes: (B, 1, 4) cxcywh (normalized)
    rsz_sizes:  (B, 2) (h, w)        ratios: (B, 2) (ratio_h, ratio_w)
    orig_sizes: (B, 2) (orig_h, orig_w)
    dxdy:       optional (B, 2) (dx, dy)
    Returns (B, 4) xyxy boxes, or (4, B) if component_major=True (avoids a
    trailing relayout when the consumer can take component-major layout).
    use_pallas: None -> auto (Pallas only for large B); True/False forces.
    """
    # TODO(synk): box_xyxy=True path (skip cxcywh->xyxy) not wired in.
    assert not box_xyxy

    boxes = jnp.squeeze(pred_boxes, axis=1).astype(jnp.float32)  # (B, 4)
    B = boxes.shape[0]
    assert rsz_sizes.shape == (B, 2)

    rsz_sizes = rsz_sizes.astype(jnp.float32)
    ratios = ratios.astype(jnp.float32)
    orig_sizes = orig_sizes.astype(jnp.float32)
    dxdy = (jnp.zeros((B, 2), jnp.float32) if dxdy is None
            else dxdy.astype(jnp.float32))

    if use_pallas is None:
        # Crossover is in the tens of thousands of boxes: below that, one
        # fused XLA elementwise pass (no pack/pad/unpack) wins.
        use_pallas = B >= PALLAS_MIN_BATCH
    if not use_pallas:
        out = _postprocess_jnp(boxes, rsz_sizes, ratios, orig_sizes, dxdy)
        return out.T if component_major else out

    tile, n_steps, Bp = _pick_tile_and_grid(B)
    pad = Bp - B

    # ---- pack the 12 unique components, component-major (12, B) ---------
    # Thin transposes + one concatenate (not 24 strided slices + stack).
    packed = jnp.concatenate(
        [boxes.T,                        # cx, cy, w, h
         rsz_sizes[:, ::-1].T,           # img_w, img_h
         dxdy.T,                         # dx, dy
         (1.0 / ratios[:, ::-1]).T,      # 1/rw, 1/rh
         orig_sizes[:, ::-1].T],         # ow, oh
        axis=0)                          # (12, B)
    if pad:
        packed = jnp.pad(packed, ((0, 0), (0, pad)), constant_values=1.0)

    out = pl.pallas_call(
        _postprocess_kernel,
        out_shape=jax.ShapeDtypeStruct((4, Bp), jnp.float32),
        grid_spec=pltpu.PrefetchScalarGridSpec(
            num_scalar_prefetch=0,
            grid=(n_steps,),
            in_specs=[pl.BlockSpec((12, tile), lambda i: (0, i))],
            out_specs=pl.BlockSpec((4, tile), lambda i: (0, i)),
        ),
        compiler_params=pltpu.CompilerParams(
            dimension_semantics=("parallel",)),
    )(packed)

    out = out[:, :B]                     # (4, B), lane-dense kernel output
    return out if component_major else out.T


def _reference(pred_boxes, rsz_sizes, ratios, orig_sizes, dxdy):
    boxes = jnp.squeeze(pred_boxes, axis=1).astype(jnp.float32)
    return _postprocess_jnp(boxes,
                            rsz_sizes.astype(jnp.float32),
                            ratios.astype(jnp.float32),
                            orig_sizes.astype(jnp.float32),
                            dxdy.astype(jnp.float32))


if __name__ == "__main__":
    key = jax.random.PRNGKey(0)
    B = 8
    k1, k2, k3, k4 = jax.random.split(key, 4)

    # pred_boxes: (B, 1, 4) normalized cxcywh
    pred_boxes = jax.random.uniform(k1, (B, 1, 4), jnp.float32, 0.1, 0.9)
    # resized sizes (h, w)
    rsz_sizes = jnp.stack(
        [jnp.full((B,), 480.0), jnp.full((B,), 640.0)], axis=1
    ) + jax.random.uniform(k2, (B, 2), jnp.float32, 0.0, 32.0)
    # ratios (ratio_h, ratio_w)
    ratios = jax.random.uniform(k3, (B, 2), jnp.float32, 0.5, 1.5)
    # original sizes (orig_h, orig_w)
    orig_sizes = rsz_sizes / ratios
    # padding offsets
    dxdy = jax.random.uniform(k4, (B, 2), jnp.float32, 0.0, 16.0)

    ref = jax.block_until_ready(
        _reference(pred_boxes, rsz_sizes, ratios, orig_sizes, dxdy))

    # Exercise the Pallas kernel path explicitly (small test batch would
    # otherwise take the fused-jnp path).
    out_pallas = jax.block_until_ready(
        post_process(pred_boxes, rsz_sizes, ratios, orig_sizes, dxdy,
                     use_pallas=True))
    assert out_pallas.shape == (B, 4)
    assert jnp.allclose(out_pallas, ref, atol=1e-4, rtol=1e-4), \
        "pallas path mismatch vs reference"

    # Component-major (transpose-free) output variant.
    out_cm = jax.block_until_ready(
        post_process(pred_boxes, rsz_sizes, ratios, orig_sizes, dxdy,
                     use_pallas=True, component_major=True))
    assert out_cm.shape == (4, B)
    assert jnp.allclose(out_cm.T, ref, atol=1e-4, rtol=1e-4), \
        "component-major pallas path mismatch vs reference"

    # Also sanity-check the auto (small-batch) path.
    out_auto = jax.block_until_ready(
        post_process(pred_boxes, rsz_sizes, ratios, orig_sizes, dxdy))
    assert jnp.allclose(out_auto, ref, atol=1e-4, rtol=1e-4), \
        "small-batch path mismatch vs reference"

    print("KERNEL_OK")
</pallas_src>

<mosaic_0001>
module attributes {stable_mosaic.version = 11 : i64} {
  func.func @_postprocess_kernel(%arg0: i32, %arg1: memref<12x128xf32, #tpu.memory_space<vmem>>, %arg2: memref<4x128xf32, #tpu.memory_space<vmem>>) attributes {dimension_semantics = [#tpu.dimension_semantics<parallel>], iteration_bounds = array<i64: 1>, scalar_prefetch = 0 : i64, scratch_operands = 0 : i64, tpu.core_type = #tpu.core_type<tc>, window_params = [{transform_indices = @transform_0, window_bounds = array<i64: 12, 128>}, {transform_indices = @transform_1, window_bounds = array<i64: 4, 128>}]} {
    %c0 = arith.constant 0 : index
    %c0_0 = arith.constant 0 : index
    %0 = vector.load %arg1[%c0, %c0_0] : memref<12x128xf32, #tpu.memory_space<vmem>>, vector<2x128xf32>
    %c2 = arith.constant 2 : index
    %c0_1 = arith.constant 0 : index
    %1 = vector.load %arg1[%c2, %c0_1] : memref<12x128xf32, #tpu.memory_space<vmem>>, vector<2x128xf32>
    %c4 = arith.constant 4 : index
    %c0_2 = arith.constant 0 : index
    %2 = vector.load %arg1[%c4, %c0_2] : memref<12x128xf32, #tpu.memory_space<vmem>>, vector<2x128xf32>
    %c6 = arith.constant 6 : index
    %c0_3 = arith.constant 0 : index
    %3 = vector.load %arg1[%c6, %c0_3] : memref<12x128xf32, #tpu.memory_space<vmem>>, vector<2x128xf32>
    %c8 = arith.constant 8 : index
    %c0_4 = arith.constant 0 : index
    %4 = vector.load %arg1[%c8, %c0_4] : memref<12x128xf32, #tpu.memory_space<vmem>>, vector<2x128xf32>
    %c10 = arith.constant 10 : index
    %c0_5 = arith.constant 0 : index
    %5 = vector.load %arg1[%c10, %c0_5] : memref<12x128xf32, #tpu.memory_space<vmem>>, vector<2x128xf32>
    %cst = arith.constant 5.000000e-01 : f32
    %6 = vector.broadcast %cst : f32 to vector<2x128xf32>
    %7 = arith.mulf %6, %1 : vector<2x128xf32>
    %8 = arith.subf %0, %7 : vector<2x128xf32>
    %9 = arith.addf %0, %7 : vector<2x128xf32>
    %10 = tpu.concatenate %8, %9 in 0 : vector<2x128xf32>, vector<2x128xf32> -> vector<4x128xf32>
    %11 = tpu.concatenate %2, %2 in 0 : vector<2x128xf32>, vector<2x128xf32> -> vector<4x128xf32>
    %12 = tpu.concatenate %3, %3 in 0 : vector<2x128xf32>, vector<2x128xf32> -> vector<4x128xf32>
    %13 = tpu.concatenate %4, %4 in 0 : vector<2x128xf32>, vector<2x128xf32> -> vector<4x128xf32>
    %14 = tpu.concatenate %5, %5 in 0 : vector<2x128xf32>, vector<2x128xf32> -> vector<4x128xf32>
    %15 = arith.mulf %10, %11 : vector<4x128xf32>
    %16 = arith.subf %15, %12 : vector<4x128xf32>
    %cst_6 = arith.constant 0.000000e+00 : f32
    %17 = vector.broadcast %cst_6 : f32 to vector<4x128xf32>
    %18 = arith.maximumf %16, %17 : vector<4x128xf32>
    %19 = arith.mulf %18, %13 : vector<4x128xf32>
    %20 = arith.minimumf %19, %14 : vector<4x128xf32>
    %c0_7 = arith.constant 0 : index
    %c0_8 = arith.constant 0 : index
    %21 = vector.load %arg2[%c0_7, %c0_8] : memref<4x128xf32, #tpu.memory_space<vmem>>, vector<4x128xf32>
    tpu.vector_store %arg2[%c0_7, %c0_8], %20 {strides = array<i32>} : memref<4x128xf32, #tpu.memory_space<vmem>>, vector<4x128xf32>,
    return
  }
  func.func @transform_0(%arg0: i32) -> (i32, i32) {
    %c0_i32 = arith.constant 0 : i32
    %c0_i32_0 = arith.constant 0 : i32
    return %c0_i32, %arg0 : i32, i32
  }
  func.func @transform_1(%arg0: i32) -> (i32, i32) {
    %c0_i32 = arith.constant 0 : i32
    %c0_i32_0 = arith.constant 0 : i32
    return %c0_i32, %arg0 : i32, i32
  }
}

</mosaic_0001>

<bundles_post_ra>
// kernel: tpu_custom_call.1
= control target key start
LH: loop header
LB: loop body
LE: loop exit
PB: predicated region body
PF: predicated region fallthrough
CT: control target
= control target key end

     0   :  { %6 = vsyncpa [#allocation3], 0  ;;  %s169_s0 = inlined_call_operand.hbm [shape: f32[12,128], index: 0, kind: input, shape index: {}]   ;;  %s170_s1 = inlined_call_operand.hbm [shape: f32[4,128], index: 1, kind: output, shape index: {}]  }
   0x1   :  { %7 = vsyncpa [#allocation4], 0  ;;  %s126_s6 = smov [#allocation2]   ;;  %s78_s10 = scalar_lea.hbm %s169_s0, 256 }
   0x2   :  { %s13_s7 = sshll.u32 %s126_s6, 4  ;;  %p79_p0 = scmp.ne.s32.totalorder %s169_s0, %s78_s10  ;;  %s14_s7 = int_to_ptr.vmem [resolvable:$true] %s13_s7 }
   0x3   :  { %p82_p1 = scmp.lt.u32.totalorder %s78_s10, %s169_s0 }
   0x5   :  { %p84_p2 = pnand %p82_p1, %p79_p0 }
   0x7   :  { %87 = shalt.err (!%p84_p2)
}
   0x8   :  { %s88_s15 = scalar_lea.vmem %s14_s7, 256  ;;  %p93_p4 = scmp.lt.s32.totalorder %s14_s7, %s14_s7 }
   0x9   :  { %p89_p3 = scmp.ne.s32.totalorder %s14_s7, %s88_s15  ;;  %p94_p5 = scmp.lt.s32.totalorder %s88_s15, %s88_s15 }
   0xb   :  { %p95_p6 = por %p94_p5, %p93_p4 }
   0xd   :  { %p96_p7 = pnand %p95_p6, %p89_p3 }
   0xf   :  { %99 = shalt.err (!%p96_p7)
}
  0x10   :  { %s127_s16 = smov 128   ;;  %s128_s17 = smov 8  }
  0x11   :  { %19 = dma.hbm_to_vmem [thread:$0]  %s169_s0, 256, %s14_s7, [#allocation3], %s127_s16, %s127_s16, %s128_s17  }
  0x12   :  { %122 = dma.done.wait [#allocation3], 256  }
  0x13   :  { %123 = vsyncadd [#allocation3], 4294967040  ;;  %v24_v0 = vld [vmem:[#allocation2 + $0x2] sm:$0x3]  ;;  %v25_v1 = vld [vmem:[#allocation2 + $0x4] sm:$0x3] }
  0x14   :  { %v23_v2 = vld [vmem:[#allocation2] sm:$0x3]  ;;  %v26_v3 = vld [vmem:[#allocation2 + $0x6] sm:$0x3]  ;;  %v29_v4 = vmul.f32 0.5, %v24_v0  ;;  %v38_v5 = vrot.slane %v25_v1, 6 }
  0x15   :  { %vm35_vm0 = vcmask 1041408   ;;  %v42_v8 = vrot.slane %v26_v3, 6  ;;  %v27_v9 = vld [vmem:[#allocation2 + $0x8] sm:$0x3]  ;;  %v28_v12 = vld [vmem:[#allocation2 + $0xa] sm:$0x3] }
  0x16   :  { %v30_v6 = vsub.f32 %v23_v2, %v29_v4  ;;  %v31_v7 = vadd.f32 %v29_v4, %v23_v2  ;;  %v40_v11 = vsel %vm35_vm0, %v25_v1, %v38_v5  ;;  %v46_v15 = vrot.slane %v27_v9, 6  ;;  %s129_s0 = smov [#allocation5]  }
  0x17   :  { %v44_v14 = vsel %vm35_vm0, %v26_v3, %v42_v8  ;;  %v50_v17 = vrot.slane %v28_v12, 6  ;;  %s65_s20 = sshll.u32 %s129_s0, 4  ;;  %s66_s20 = int_to_ptr.vmem [resolvable:$true] %s65_s20 }
  0x18   :  { %v33_v10 = vrot.slane %v31_v7, 6  ;;  %v48_v19 = vsel %vm35_vm0, %v27_v9, %v46_v15  ;;  %s100_s21 = scalar_lea.vmem %s66_s20, 64  ;;  %p105_p9 = scmp.lt.s32.totalorder %s66_s20, %s66_s20 }
  0x19   :  { %v52_v21 = vsel %vm35_vm0, %v28_v12, %v50_v17  ;;  %p101_p8 = scmp.ne.s32.totalorder %s66_s20, %s100_s21  ;;  %p106_p10 = scmp.lt.s32.totalorder %s100_s21, %s100_s21 }
  0x1a   :  { %v36_v13 = vsel %vm35_vm0, %v30_v6, %v33_v10 }
  0x1b   :  { %v53_v16 = vmul.f32 %v40_v11, %v36_v13  ;;  %p107_p11 = por %p106_p10, %p105_p9 }
  0x1d   :  { %v54_v18 = vsub.f32 %v53_v16, %v44_v14  ;;  %p108_p12 = pnand %p107_p11, %p101_p8 }
  0x1f   :  { %v55_v20 = vmax.f32 %v54_v18, 0.0 }
  0x21   :  { %v56_v22 = vmul.f32 %v55_v20, %v48_v19 }
  0x23   :  { %v57_v23 = vmin.f32 %v56_v22, %v52_v21 }
  0x25   :  { %58 = vst [vmem:[#allocation5] sm:$0xf] %v57_v23 }
  0x26   :  { %111 = shalt.err (!%p108_p12)
}
  0x27   :  { %s112_s24 = scalar_lea.hbm %s170_s1, 64 }
  0x28   :  { %p113_p13 = scmp.ne.s32.totalorder %s170_s1, %s112_s24  ;;  %p116_p0 = scmp.lt.u32.totalorder %s112_s24, %s170_s1 }
  0x2a   :  { %p118_p1 = pnand %p116_p0, %p113_p13 }
  0x2c   :  { %121 = shalt.err (!%p118_p1)
}
  0x2d   :  { %68 = dma.vmem_to_hbm [thread:$0]  %s66_s20, 64, %s170_s1, [#allocation4]  }
  0x2e   :  { %124 = dma.done.wait [#allocation4], 64  }
  0x2f   :  { %125 = vsyncadd [#allocation4], 4294967232 }
  0x30   :  { %72 = vsyncpa [#allocation3], 1 }
  0x31   :  { %73 = vsyncpa [#allocation4], 1 }

</bundles_post_ra>
